<compile_context>
chip_gen: v7x
topology: tpu7x:2x2x1
jax: 0.10.0
libtpu: 0.0.40
codegen_flags: <defaults>
</compile_context>

<pallas_src>
import jax
import jax.numpy as jnp
from jax.experimental import pallas as pl
from jax.experimental.pallas import tpu as pltpu


def _round_up(a, b):
    return ((a + b - 1) // b) * b


def _cdiv(a, b):
    return (a + b - 1) // b


# ----------------------------------------------------------------------------
# Kernel 1: streaming global-average-pool over the spatial (lane) axis.
#   grid = (row_tiles [parallel], hw_tiles [arbitrary / reduction])
#   x view: (N*C, H*W); rows on sublanes, spatial on lanes.
# ----------------------------------------------------------------------------
def _make_pool_kernel(hw_total, hw_tile, needs_mask):
    inv_hw = 1.0 / float(hw_total)
    n_chunks = hw_tile // 128

    def kernel(x_ref, o_ref, acc_ref):
        k = pl.program_id(1)
        base = k * hw_tile

        def chunk(j):
            c = x_ref[:, j * 128:(j + 1) * 128].astype(jnp.float32)
            if needs_mask:
                # In-kernel spatial-tail masking (replaces wrapper jnp.pad).
                col = base + j * 128 + jax.lax.broadcasted_iota(
                    jnp.int32, c.shape, 1)
                c = jnp.where(col < hw_total, c, 0.0)
            return c

        # Static add tree folding hw_tile lanes -> 128 lanes (VPU only).
        def fold(lo, hi):
            if hi - lo == 1:
                return chunk(lo)
            mid = (lo + hi) // 2
            return fold(lo, mid) + fold(mid, hi)

        part = fold(0, n_chunks)

        @pl.when(k == 0)
        def _init():
            acc_ref[...] = part          # assign, not zero+add

        @pl.when(k > 0)
        def _accum():
            acc_ref[...] += part

        @pl.when(k == pl.num_programs(1) - 1)
        def _finalize():
            # Single small cross-lane (XLU) reduce in the epilogue.
            pooled = jnp.sum(acc_ref[...], axis=-1, keepdims=True) * inv_hw
            o_ref[...] = pooled.astype(o_ref.dtype)

    return kernel


# ----------------------------------------------------------------------------
# Kernel 2a: h = relu(pooled @ w1^T + b1), reduction tiled over C.
# ----------------------------------------------------------------------------
def _mlp_reduce_kernel(p_ref, w1t_ref, b1_ref, h_ref, acc_ref):
    k = pl.program_id(0)

    @pl.when(k == 0)
    def _init():
        acc_ref[...] = jnp.zeros_like(acc_ref)

    acc_ref[...] += jnp.dot(p_ref[...], w1t_ref[...],
                            preferred_element_type=jnp.float32)

    @pl.when(k == pl.num_programs(0) - 1)
    def _finalize():
        h_ref[...] = jnp.maximum(acc_ref[...] + b1_ref[...], 0.0)


# ----------------------------------------------------------------------------
# Kernel 2b: y = sigmoid(h @ w2^T + b2), output tiled over C.
# ----------------------------------------------------------------------------
def _mlp_out_kernel(h_ref, w2t_ref, b2_ref, o_ref):
    y = jnp.dot(h_ref[...], w2t_ref[...],
                preferred_element_type=jnp.float32) + b2_ref[...]
    o_ref[...] = jax.nn.sigmoid(y).astype(o_ref.dtype)


def _pick_c_tile(C, Cmid, itemsize):
    """Channel tile for the MLP weight blocks; must divide C exactly."""
    budget = 8 * 1024 * 1024          # per weight block (2x when double-buffered)
    if C % 128 != 0 or C * Cmid * itemsize <= 2 * budget:
        # TODO(synk): non-128-multiple large C would need boundary masking in
        # the reduction; fall back to whole-C blocks for those (rare) shapes.
        return C
    tc = C
    while tc > 128 and (C % tc != 0 or tc * Cmid * itemsize > budget):
        tc -= 128
    return max(tc, 128)


def channel_attention(x, w1, b1, w2, b2, *,
                      row_tile_target=512, hw_tile_target=4096):
    """x: (N, C, H, W); w1: (C//2, C), b1: (C//2,), w2: (C, C//2), b2: (C,).
    Returns (N, C, 1, 1) — same semantics as the PyTorch module's forward."""
    N, C, H, W = x.shape
    Cmid = w1.shape[0]
    HW = H * W
    R = N * C

    # ---- 2D streaming view: rows = (n, c) pairs, lanes = spatial ------------
    x2d = x.reshape(R, HW)            # contiguous reshape: no data movement

    # Adaptive spatial tile: one reduction step when the whole row fits.
    hw_full = _round_up(HW, 128)
    hw_tile = hw_full if hw_full <= hw_tile_target else hw_tile_target
    needs_mask = (HW % hw_tile) != 0  # logical padding via grid, masked in-kernel

    row_tile = min(row_tile_target, _round_up(R, 8))
    # v7x megacore: make sure the "parallel" row axis has >= 2 tiles.
    if R > 8 and _cdiv(R, row_tile) < 2:
        row_tile = max(8, _round_up(_cdiv(R, 2), 8))

    grid = (_cdiv(R, row_tile), _cdiv(HW, hw_tile))

    # Double-buffered input block + 128-wide f32 acc + headroom; cap for v7x.
    itemsize = jnp.dtype(x.dtype).itemsize
    vmem_needed = 2 * row_tile * hw_tile * itemsize + row_tile * 128 * 4 + (2 << 20)
    vmem_limit = int(min(max(vmem_needed, 32 * 1024 * 1024), 48 * 1024 * 1024))

    pooled = pl.pallas_call(
        _make_pool_kernel(HW, hw_tile, needs_mask),
        out_shape=jax.ShapeDtypeStruct((R, 1), jnp.float32),
        grid_spec=pltpu.PrefetchScalarGridSpec(
            num_scalar_prefetch=0,
            grid=grid,
            in_specs=[pl.BlockSpec((row_tile, hw_tile), lambda r, k: (r, k))],
            out_specs=pl.BlockSpec((row_tile, 1), lambda r, k: (r, 0)),
            scratch_shapes=[pltpu.VMEM((row_tile, 128), jnp.float32)],
        ),
        compiler_params=pltpu.CompilerParams(
            dimension_semantics=("parallel", "arbitrary"),
            vmem_limit_bytes=vmem_limit,
        ),
    )(x2d)

    # (R, 1) -> (N, C); no slicing needed (Pallas masks the row-tail stores).
    # TODO(synk): emit pooled lane-dense as (N, C) (and fuse the MLP into the
    # pool epilogue when N*C fits one row tile) to save a kernel launch — pure
    # latency, not bandwidth, so left out here.
    pooled2d = pooled.reshape(N, C)

    # ---- tiny squeeze-excite MLP, tiled over C so weights stay VMEM-safe ----
    w1t = jnp.transpose(w1)           # (C, Cmid)
    w2t = jnp.transpose(w2)           # (Cmid, C)
    b1_2d = b1.reshape(1, Cmid)
    b2_2d = b2.reshape(1, C)

    tc = _pick_c_tile(C, Cmid, jnp.dtype(w1.dtype).itemsize)
    n_ct = _cdiv(C, tc)

    h = pl.pallas_call(
        _mlp_reduce_kernel,
        out_shape=jax.ShapeDtypeStruct((N, Cmid), jnp.float32),
        grid_spec=pltpu.PrefetchScalarGridSpec(
            num_scalar_prefetch=0,
            grid=(n_ct,),
            in_specs=[pl.BlockSpec((N, tc), lambda k: (0, k)),
                      pl.BlockSpec((tc, Cmid), lambda k: (k, 0)),
                      pl.BlockSpec((1, Cmid), lambda k: (0, 0))],
            out_specs=pl.BlockSpec((N, Cmid), lambda k: (0, 0)),
            scratch_shapes=[pltpu.VMEM((N, Cmid), jnp.float32)],
        ),
        compiler_params=pltpu.CompilerParams(
            dimension_semantics=("arbitrary",)),
    )(pooled2d, w1t, b1_2d)

    att = pl.pallas_call(
        _mlp_out_kernel,
        out_shape=jax.ShapeDtypeStruct((N, C), x.dtype),
        grid_spec=pltpu.PrefetchScalarGridSpec(
            num_scalar_prefetch=0,
            grid=(n_ct,),
            in_specs=[pl.BlockSpec((N, Cmid), lambda j: (0, 0)),
                      pl.BlockSpec((Cmid, tc), lambda j: (0, j)),
                      pl.BlockSpec((1, tc), lambda j: (0, j))],
            out_specs=pl.BlockSpec((N, tc), lambda j: (0, j)),
        ),
        compiler_params=pltpu.CompilerParams(
            dimension_semantics=("parallel",)),
    )(h, w2t, b2_2d)

    return att.reshape(N, C, 1, 1)


def _reference(x, w1, b1, w2, b2):
    pooled = jnp.mean(x, axis=(2, 3))                 # (N, C)
    h = jnp.maximum(pooled @ w1.T + b1, 0.0)          # (N, C//2)
    y = jax.nn.sigmoid(h @ w2.T + b2)                 # (N, C)
    return y[:, :, None, None]


if __name__ == "__main__":
    N, C, H, W = 2, 4, 16, 16
    Cmid = C // 2

    key = jax.random.PRNGKey(0)
    kx, k1, k2, k3, k4 = jax.random.split(key, 5)

    x = jax.random.normal(kx, (N, C, H, W), dtype=jnp.float32)
    # Parameters with nn.Conv2d(C, C//2, 1) / nn.Conv2d(C//2, C, 1) shapes
    # (1x1 kernels squeezed to matrices).
    w1 = jax.random.normal(k1, (Cmid, C), dtype=jnp.float32) * (1.0 / jnp.sqrt(C))
    b1 = jax.random.normal(k2, (Cmid,), dtype=jnp.float32) * 0.1
    w2 = jax.random.normal(k3, (C, Cmid), dtype=jnp.float32) * (1.0 / jnp.sqrt(Cmid))
    b2 = jax.random.normal(k4, (C,), dtype=jnp.float32) * 0.1

    out = channel_attention(x, w1, b1, w2, b2)
    out = jax.block_until_ready(out)

    ref = _reference(x, w1, b1, w2, b2)
    assert out.shape == (N, C, 1, 1)
    assert jnp.allclose(out, ref, atol=1e-5, rtol=1e-5)

    print("KERNEL_OK")
</pallas_src>

<mosaic_0001>
module attributes {stable_mosaic.version = 11 : i64} {
  func.func @kernel(%arg0: i32, %arg1: i32, %arg2: memref<8x256xf32, #tpu.memory_space<vmem>>, %arg3: memref<8x1xf32, #tpu.memory_space<vmem>>, %arg4: memref<8x128xf32, #tpu.memory_space<vmem>>) attributes {dimension_semantics = [#tpu.dimension_semantics<parallel>, #tpu.dimension_semantics<arbitrary>], iteration_bounds = array<i64: 1, 1>, scalar_prefetch = 0 : i64, scratch_operands = 1 : i64, tpu.core_type = #tpu.core_type<tc>, window_params = [{transform_indices = @transform_0, window_bounds = array<i64: 8, 256>}, {transform_indices = @transform_1, window_bounds = array<i64: 8, 1>}]} {
    %c0 = arith.constant 0 : index
    %c0_0 = arith.constant 0 : index
    %0 = vector.load %arg2[%c0, %c0_0] : memref<8x256xf32, #tpu.memory_space<vmem>>, vector<8x128xf32>
    %c0_1 = arith.constant 0 : index
    %c128 = arith.constant 128 : index
    %1 = vector.load %arg2[%c0_1, %c128] : memref<8x256xf32, #tpu.memory_space<vmem>>, vector<8x128xf32>
    %2 = arith.addf %0, %1 : vector<8x128xf32>
    %c0_i32 = arith.constant 0 : i32
    %3 = arith.cmpi eq, %arg1, %c0_i32 : i32
    %4 = arith.extui %3 : i1 to i32
    %c0_i32_2 = arith.constant 0 : i32
    %5 = arith.cmpi ne, %4, %c0_i32_2 : i32
    scf.if %5 {
      %c0_7 = arith.constant 0 : index
      %c0_8 = arith.constant 0 : index
      %12 = vector.load %arg4[%c0_7, %c0_8] : memref<8x128xf32, #tpu.memory_space<vmem>>, vector<8x128xf32>
      tpu.vector_store %arg4[%c0_7, %c0_8], %2 {strides = array<i32>} : memref<8x128xf32, #tpu.memory_space<vmem>>, vector<8x128xf32>,
    } else {
    }
    %c0_i32_3 = arith.constant 0 : i32
    %6 = arith.cmpi sgt, %arg1, %c0_i32_3 : i32
    %7 = arith.extui %6 : i1 to i32
    %c0_i32_4 = arith.constant 0 : i32
    %8 = arith.cmpi ne, %7, %c0_i32_4 : i32
    scf.if %8 {
      %c0_7 = arith.constant 0 : index
      %c0_8 = arith.constant 0 : index
      %12 = vector.load %arg4[%c0_7, %c0_8] : memref<8x128xf32, #tpu.memory_space<vmem>>, vector<8x128xf32>
      %13 = arith.addf %12, %2 : vector<8x128xf32>
      %c0_9 = arith.constant 0 : index
      %c0_10 = arith.constant 0 : index
      %14 = vector.load %arg4[%c0_9, %c0_10] : memref<8x128xf32, #tpu.memory_space<vmem>>, vector<8x128xf32>
      tpu.vector_store %arg4[%c0_9, %c0_10], %13 {strides = array<i32>} : memref<8x128xf32, #tpu.memory_space<vmem>>, vector<8x128xf32>,
    } else {
    }
    %c0_i32_5 = arith.constant 0 : i32
    %9 = arith.cmpi eq, %arg1, %c0_i32_5 : i32
    %10 = arith.extui %9 : i1 to i32
    %c0_i32_6 = arith.constant 0 : i32
    %11 = arith.cmpi ne, %10, %c0_i32_6 : i32
    scf.if %11 {
      %c0_7 = arith.constant 0 : index
      %c0_8 = arith.constant 0 : index
      %12 = vector.load %arg4[%c0_7, %c0_8] : memref<8x128xf32, #tpu.memory_space<vmem>>, vector<8x128xf32>
      %cst = arith.constant dense<0.000000e+00> : vector<8xf32>
      %13 = vector.multi_reduction <add>, %12, %cst [1] : vector<8x128xf32> to vector<8xf32>
      %14 = vector.shape_cast %13 : vector<8xf32> to vector<8x1xf32>
      %cst_9 = arith.constant 3.906250e-03 : f32
      %15 = vector.broadcast %cst_9 : f32 to vector<8x1xf32>
      %16 = arith.mulf %14, %15 : vector<8x1xf32>
      %c0_10 = arith.constant 0 : index
      %c0_11 = arith.constant 0 : index
      %17 = vector.load %arg3[%c0_10, %c0_11] : memref<8x1xf32, #tpu.memory_space<vmem>>, vector<8x1xf32>
      tpu.vector_store %arg3[%c0_10, %c0_11], %16 {strides = array<i32>} : memref<8x1xf32, #tpu.memory_space<vmem>>, vector<8x1xf32>,
    } else {
    }
    return
  }
  func.func @transform_0(%arg0: i32, %arg1: i32) -> (i32, i32) {
    %c0_i32 = arith.constant 0 : i32
    return %arg0, %arg1 : i32, i32
  }
  func.func @transform_1(%arg0: i32, %arg1: i32) -> (i32, i32) {
    %c0_i32 = arith.constant 0 : i32
    %c0_i32_0 = arith.constant 0 : i32
    return %arg0, %c0_i32 : i32, i32
  }
}

</mosaic_0001>

<bundles_post_ra>
// kernel: tpu_custom_call.1
= control target key start
LH: loop header
LB: loop body
LE: loop exit
PB: predicated region body
PF: predicated region fallthrough
CT: control target
= control target key end

     0   :  { %6 = vsyncpa [#allocation4], 0  ;;  %s74_s6 = smov [#allocation3]   ;;  %s100_s0 = inlined_call_operand.hbm [shape: f32[8,256], index: 0, kind: input, shape index: {}]   ;;  %s101_s1 = inlined_call_operand.vmem [shape: f32[8,1], index: 1, kind: output, shape index: {}]  }
   0x1   :  { %s13_s7 = sshll.u32 %s74_s6, 4  ;;  %s50_s10 = scalar_lea.hbm %s100_s0, 256  ;;  %s14_s7 = int_to_ptr.vmem [resolvable:$true] %s13_s7 }
   0x2   :  { %p51_p0 = scmp.ne.s32.totalorder %s100_s0, %s50_s10  ;;  %p54_p1 = scmp.lt.u32.totalorder %s50_s10, %s100_s0 }
   0x4   :  { %p56_p2 = pnand %p54_p1, %p51_p0 }
   0x6   :  { %59 = shalt.err (!%p56_p2)
}
   0x7   :  { %s60_s15 = scalar_lea.vmem %s14_s7, 256  ;;  %p65_p4 = scmp.lt.s32.totalorder %s14_s7, %s14_s7 }
   0x8   :  { %p61_p3 = scmp.ne.s32.totalorder %s14_s7, %s60_s15  ;;  %p66_p5 = scmp.lt.s32.totalorder %s60_s15, %s60_s15 }
   0xa   :  { %p67_p6 = por %p66_p5, %p65_p4 }
   0xc   :  { %p68_p7 = pnand %p67_p6, %p61_p3 }
   0xe   :  { %71 = shalt.err (!%p68_p7)
}
   0xf   :  { %16 = dma.hbm_to_vmem [thread:$0]  %s100_s0, 256, %s14_s7, [#allocation4]  }
  0x10   :  { %72 = dma.done.wait [#allocation4], 256  }
  0x11   :  { %73 = vsyncadd [#allocation4], 4294967040  ;;  %v20_v0 = vld [vmem:[#allocation3] sm:$0xff]  ;;  %v21_v1 = vld [vmem:[#allocation3 + $0x8] sm:$0xff]  ;;  %vm42_vm0 = vcmask 7168  }
  0x12   :  { %v22_v2 = vadd.f32 %v21_v1, %v20_v0 }
  0x14   :  { %39 = vadd.xlane.f32.xlu0 %v22_v2 }
  0xa1   :  { %v40_v3 = vpop.xlane.xlu0 %39 }
  0xa2   :  { %v41_v4 = vmul.f32 0.00390625, %v40_v3 }
  0xa4   :  { %43 = vst.msk [vmem:[%s101_s1] sm:$0xff] %vm42_vm0, %v41_v4 }
  0xa5   :  { %48 = vsyncpa [#allocation4], 1 }

</bundles_post_ra>
